<compile_context>
chip_gen: v5e
topology: v5e:2x2
jax: 0.10.0
libtpu: 0.0.40
codegen_flags: <defaults>
</compile_context>

<pallas_src>
import math
from functools import partial

import jax
import jax.numpy as jnp
from jax.experimental import pallas as pl
from jax.experimental.pallas import tpu as pltpu


# --------------------------------------------------------------------------------------
# small helpers
# --------------------------------------------------------------------------------------
def _pick_tile(total, preferred):
    for t in preferred:
        if t <= total and total % t == 0:
            return t
    return total


def _vmem_limit_bytes():
    """Generation-aware scoped-VMEM limit (~85% of physical per-core VMEM)."""
    cap = None
    if hasattr(pltpu, "get_tpu_info"):
        try:
            cap = getattr(pltpu.get_tpu_info(), "vmem_capacity_bytes", None)
        except Exception:  # hardware-query helper only; never masks kernel errors
            cap = None
    if not cap:
        cap = 64 * 1024 * 1024  # conservative default: v7x physical per-core VMEM
    return int(cap * 0.85)


_BUFFERED_PROBE = {}


def _single_buffer_mode():
    """Explicit feature probe: return pl.Buffered(1) if single-buffered BlockSpecs are
    supported by this JAX/Mosaic build, else None.  The probe is a tiny throwaway kernel;
    the real encoder kernels are built OUTSIDE any try/except so genuine lowering or
    runtime errors are never silently swallowed."""
    if "mode" in _BUFFERED_PROBE:
        return _BUFFERED_PROBE["mode"]
    mode = None
    if hasattr(pl, "Buffered"):
        try:
            cand = pl.Buffered(1)

            def _probe(x_ref, o_ref):
                o_ref[...] = x_ref[...] + jnp.float32(1.0)

            y = pl.pallas_call(
                _probe,
                out_shape=jax.ShapeDtypeStruct((8, 128), jnp.float32),
                grid=(1,),
                in_specs=[pl.BlockSpec((8, 128), lambda i: (0, 0), pipeline_mode=cand)],
                out_specs=pl.BlockSpec((8, 128), lambda i: (0, 0)),
            )(jnp.zeros((8, 128), jnp.float32))
            jax.block_until_ready(y)
            mode = cand
        except Exception:  # feature probe only
            mode = None
    _BUFFERED_PROBE["mode"] = mode
    return mode


# --------------------------------------------------------------------------------------
# kernel 1: K/V projection, computed ONCE per token (hoisted out of the query-tile grid)
# --------------------------------------------------------------------------------------
def _kv_proj_kernel(x_ref, wkT_ref, bk_ref, wvT_ref, bv_ref, k_ref, v_ref, *, matmul_dtype):
    x = x_ref[...].astype(matmul_dtype)                         # (tm, D)
    # EncoderLayer.forward deliberately swaps the projections: K <- linear_v, V <- linear_k.
    k = jnp.dot(x, wvT_ref[...], preferred_element_type=jnp.float32) + bv_ref[...]
    v = jnp.dot(x, wkT_ref[...], preferred_element_type=jnp.float32) + bk_ref[...]
    k_ref[...] = k.astype(matmul_dtype)
    v_ref[...] = v.astype(matmul_dtype)


# --------------------------------------------------------------------------------------
# kernel 2: attention + output projection + LN1 + FFN + LN2 on one (tq, D) query tile
# --------------------------------------------------------------------------------------
def encoder_layer_kernel(xq_ref, k_ref, v_ref, mask_ref,
                         wqT_ref, bq_ref, woT_ref, bo_ref,
                         g1_ref, be1_ref,
                         w1T_ref, bf1_ref, w2T_ref, bf2_ref,
                         g2_ref, be2_ref,
                         o_ref,
                         ctx_ref,
                         *, n_heads, heads_per_group, eps, ff_block, matmul_dtype):
    xq = xq_ref[0]                       # (tq, D) f32: query tile / residual stream
    k = k_ref[0]                         # (S, D)  matmul_dtype (pre-projected K)
    v = v_ref[0]                         # (S, D)  matmul_dtype (pre-projected V)
    tq, D = xq.shape
    dk = D // n_heads
    scale = 1.0 / math.sqrt(dk)

    # int8 {0,1} mask -> additive {0, -1e9} bias (one VPU convert+mul; == masked_fill_(-1e9)
    # except for rows where every key is masked).
    neg_bias = mask_ref[0].astype(jnp.float32) * jnp.float32(-1e9)       # (tq, S)

    # Q projection on the query tile only (K/V were hoisted); fold 1/sqrt(dk) into q.
    q = (jnp.dot(xq.astype(matmul_dtype), wqT_ref[...],
                 preferred_element_type=jnp.float32) + bq_ref[...]) * scale
    q = q.astype(matmul_dtype)

    # Per-head attention; heads processed in lane-dense groups so every ctx store is a
    # full (tq, >=128)-wide unmasked slab.
    qk_dims = (((1,), (1,)), ((), ()))   # contract dk of both operands -> (tq, S)
    for g0 in range(0, n_heads, heads_per_group):
        parts = []
        for h in range(g0, g0 + heads_per_group):
            lo = h * dk
            qh = q[:, lo:lo + dk]
            kh = k[:, lo:lo + dk]
            vh = v[:, lo:lo + dk]
            s = jax.lax.dot_general(qh, kh, dimension_numbers=qk_dims,
                                    preferred_element_type=jnp.float32)
            s = s + neg_bias
            s = s - jnp.max(s, axis=-1, keepdims=True)       # numerically stable softmax
            p = jnp.exp(s)
            l = jnp.sum(p, axis=-1, keepdims=True)           # (tq, 1)
            ctx_h = jnp.dot(p.astype(matmul_dtype), vh,
                            preferred_element_type=jnp.float32)          # (tq, dk)
            parts.append(ctx_h / l)      # exact normalization, applied post-V-matmul (O(tq*dk))
        slab = parts[0] if len(parts) == 1 else jnp.concatenate(parts, axis=-1)
        ctx_ref[:, g0 * dk:(g0 + heads_per_group) * dk] = slab

    # output projection + residual + layernorm1   (dropout1: identity)
    attn_out = jnp.dot(ctx_ref[...].astype(matmul_dtype), woT_ref[...],
                       preferred_element_type=jnp.float32) + bo_ref[...]
    res1 = xq + attn_out

    def layernorm(inp, g_ref, b_ref):
        mu = jnp.mean(inp, axis=-1, keepdims=True)
        var = jnp.mean((inp - mu) ** 2, axis=-1, keepdims=True)
        return (inp - mu) * jax.lax.rsqrt(var + eps) * g_ref[...] + b_ref[...]

    ln1 = layernorm(res1, g1_ref, be1_ref)

    # feed-forward (chunked over d_ff); accumulator seeded with bf2 (broadcasts on first add)
    d_ff = w1T_ref.shape[1]
    ln1_c = ln1.astype(matmul_dtype)
    ffn = bf2_ref[...]                                        # (1, D) f32
    for c in range(d_ff // ff_block):
        sl = slice(c * ff_block, (c + 1) * ff_block)
        h1 = jnp.dot(ln1_c, w1T_ref[:, sl],
                     preferred_element_type=jnp.float32) + bf1_ref[:, sl]
        h1 = jnp.maximum(h1, 0.0)                             # ReLU
        ffn = ffn + jnp.dot(h1.astype(matmul_dtype), w2T_ref[sl, :],
                            preferred_element_type=jnp.float32)
    # dropout2: identity
    res2 = ln1 + ffn
    o_ref[0] = layernorm(res2, g2_ref, be2_ref)


# --------------------------------------------------------------------------------------
# wrappers
# --------------------------------------------------------------------------------------
def prepare_encoder_params(params, matmul_dtype=jnp.bfloat16):
    """One-time parameter prep (call once, outside the per-step forward): weights ->
    (in, out) layout cast to the MXU operand dtype, 1-D params -> (1, N) f32 rows."""
    row = lambda v: jnp.asarray(v, jnp.float32).reshape(1, -1)
    wT = lambda w: jnp.asarray(w).T.astype(matmul_dtype)
    return {
        'wqT': wT(params['wq']), 'bq': row(params['bq']),
        'wkT': wT(params['wk']), 'bk': row(params['bk']),
        'wvT': wT(params['wv']), 'bv': row(params['bv']),
        'woT': wT(params['wo']), 'bo': row(params['bo']),
        'g1': row(params['g1']), 'be1': row(params['be1']),
        'w1T': wT(params['w1']), 'bf1': row(params['bf1']),
        'w2T': wT(params['w2']), 'bf2': row(params['bf2']),
        'g2': row(params['g2']), 'be2': row(params['be2']),
        'matmul_dtype': matmul_dtype,
    }


def encoder_layer(x, attn_mask, prep, *, n_heads, eps=1e-5,
                  q_block=None, ff_block=None, kv_block=None, single_buffer_params=True):
    """x: (B, S, D) f32.  attn_mask: (B, S, S) bool (True == masked).
    prep: output of prepare_encoder_params."""
    B, S, D = x.shape
    matmul_dtype = prep['matmul_dtype']
    d_ff = prep['w1T'].shape[1]
    assert D % n_heads == 0, "d_model must be divisible by n_heads"
    dk = D // n_heads

    # ---- tiling decisions -------------------------------------------------------------
    # Query tile: >=256 keeps v6e/v7x's 256-wide MXUs full (v5e's 128-wide MXU is already
    # full at 128; 256 costs nothing there).  Must be a multiple of 8 or span S.
    if q_block is not None and q_block % 8 == 0 and S % q_block == 0:
        tq = q_block
    else:
        tq = _pick_tile(S, (256, 128, 64, 32, 16, 8))
    n_q = S // tq

    # FFN chunk: keep >=512 (multiple of 256) when chunking so neither matmul underfills the MXU.
    if ff_block is None or ff_block <= 0 or d_ff % ff_block != 0:
        ff_block = d_ff if d_ff <= 2048 else _pick_tile(d_ff, (2048, 1024, 512))

    # Lane-dense head grouping: group 128//dk heads so ctx stores are >=128 lanes wide.
    if dk >= 128 or 128 % dk != 0:
        hpg = 1
    else:
        hpg = min(n_heads, 128 // dk)
        while n_heads % hpg:
            hpg -= 1

    vmem_limit = _vmem_limit_bytes()
    buffered_one = _single_buffer_mode() if single_buffer_params else None
    sb_kw = {} if buffered_one is None else {'pipeline_mode': buffered_one}

    # ---- stage 1: K/V projections, once per token (hoisted out of the query-tile grid) --
    R = B * S
    if kv_block is not None and kv_block % 8 == 0 and R % kv_block == 0:
        tm = kv_block
    else:
        tm = _pick_tile(R, (512, 256, 128, 64, 32, 16, 8))
    x2d = x.reshape(R, D)

    def cspec1(shape):   # constant-block-index params for the 1-D grid
        return pl.BlockSpec(shape, lambda r: (0,) * len(shape), **sb_kw)

    k2d, v2d = pl.pallas_call(
        partial(_kv_proj_kernel, matmul_dtype=matmul_dtype),
        out_shape=(jax.ShapeDtypeStruct((R, D), matmul_dtype),
                   jax.ShapeDtypeStruct((R, D), matmul_dtype)),
        grid=(R // tm,),
        in_specs=[pl.BlockSpec((tm, D), lambda r: (r, 0)),
                  cspec1((D, D)), cspec1((1, D)),          # wkT, bk
                  cspec1((D, D)), cspec1((1, D))],         # wvT, bv
        out_specs=[pl.BlockSpec((tm, D), lambda r: (r, 0)),
                   pl.BlockSpec((tm, D), lambda r: (r, 0))],
        compiler_params=pltpu.CompilerParams(
            dimension_semantics=("parallel",),
            vmem_limit_bytes=vmem_limit),
    )(x2d, prep['wkT'], prep['bk'], prep['wvT'], prep['bv'])
    k3d = k2d.reshape(B, S, D)
    v3d = v2d.reshape(B, S, D)

    # ---- stage 2: per-query-tile attention + output proj + LN1 + FFN + LN2 --------------
    mask_i8 = attn_mask.astype(jnp.int8)    # 4x less mask DMA/VMEM than a f32 bias

    def cspec2(shape):   # constant-block-index params for the 2-D grid (single-buffered)
        return pl.BlockSpec(shape, lambda b, qi: (0,) * len(shape), **sb_kw)

    def kvspec():        # full-sequence K/V: index only changes on the batch axis
        return pl.BlockSpec((1, S, D), lambda b, qi: (b, 0, 0), **sb_kw)

    kernel = partial(encoder_layer_kernel, n_heads=n_heads, heads_per_group=hpg,
                     eps=eps, ff_block=ff_block, matmul_dtype=matmul_dtype)

    return pl.pallas_call(
        kernel,
        out_shape=jax.ShapeDtypeStruct((B, S, D), jnp.float32),
        grid=(B, n_q),
        in_specs=[
            pl.BlockSpec((1, tq, D), lambda b, qi: (b, qi, 0)),     # x query tile / residual
            kvspec(),                                               # K (pre-projected)
            kvspec(),                                               # V (pre-projected)
            pl.BlockSpec((1, tq, S), lambda b, qi: (b, qi, 0)),     # int8 mask tile
            cspec2((D, D)), cspec2((1, D)),                         # wqT, bq
            cspec2((D, D)), cspec2((1, D)),                         # woT, bo
            cspec2((1, D)), cspec2((1, D)),                         # gamma1, beta1
            cspec2((D, d_ff)), cspec2((1, d_ff)),                   # w1T, bf1
            cspec2((d_ff, D)), cspec2((1, D)),                      # w2T, bf2
            cspec2((1, D)), cspec2((1, D)),                         # gamma2, beta2
        ],
        out_specs=pl.BlockSpec((1, tq, D), lambda b, qi: (b, qi, 0)),   # lane-dense output slab
        scratch_shapes=[pltpu.VMEM((tq, D), jnp.float32)],              # ctx assembly
        compiler_params=pltpu.CompilerParams(
            dimension_semantics=("parallel", "parallel"),
            vmem_limit_bytes=vmem_limit),
    )(x, k3d, v3d, mask_i8,
      prep['wqT'], prep['bq'], prep['woT'], prep['bo'],
      prep['g1'], prep['be1'], prep['w1T'], prep['bf1'], prep['w2T'], prep['bf2'],
      prep['g2'], prep['be2'])


# ------------------------- pure-JAX reference (for checking) -------------------------
def encoder_layer_ref(x, attn_mask, params, *, n_heads, eps=1e-5):
    B, S, D = x.shape
    dk = D // n_heads

    def lin(inp, w, b):
        return inp @ w.T + b

    q = lin(x, params['wq'], params['bq'])
    k = lin(x, params['wv'], params['bv'])   # same deliberate swap as the PyTorch forward
    v = lin(x, params['wk'], params['bk'])

    qh = q.reshape(B, S, n_heads, dk).transpose(0, 2, 1, 3)
    kh = k.reshape(B, S, n_heads, dk).transpose(0, 2, 1, 3)
    vh = v.reshape(B, S, n_heads, dk).transpose(0, 2, 1, 3)

    scores = jnp.einsum('bhqd,bhkd->bhqk', qh, kh) / math.sqrt(dk)
    scores = jnp.where(attn_mask[:, None, :, :], -1e9, scores)
    w = jax.nn.softmax(scores, axis=-1)
    ctx = jnp.einsum('bhqk,bhkd->bhqd', w, vh)
    ctx = ctx.transpose(0, 2, 1, 3).reshape(B, S, D)

    attn_out = lin(ctx, params['wo'], params['bo'])
    res1 = x + attn_out

    def ln(inp, g, b):
        mu = inp.mean(-1, keepdims=True)
        var = ((inp - mu) ** 2).mean(-1, keepdims=True)
        return (inp - mu) / jnp.sqrt(var + eps) * g + b

    ln1 = ln(res1, params['g1'], params['be1'])
    h = jax.nn.relu(lin(ln1, params['w1'], params['bf1']))
    ffn = lin(h, params['w2'], params['bf2'])
    return ln(ln1 + ffn, params['g2'], params['be2'])


if __name__ == "__main__":
    B, S, D, H, d_ff = 2, 8, 32, 4, 64
    key = jax.random.PRNGKey(0)
    ks = jax.random.split(key, 16)

    def w(k, shape, scale=0.1):
        return (scale * jax.random.normal(k, shape)).astype(jnp.float32)

    params = {
        'wq': w(ks[0], (D, D)),  'bq': w(ks[1], (D,)),
        'wk': w(ks[2], (D, D)),  'bk': w(ks[3], (D,)),
        'wv': w(ks[4], (D, D)),  'bv': w(ks[5], (D,)),
        'wo': w(ks[6], (D, D)),  'bo': w(ks[7], (D,)),
        'g1': jnp.ones((D,), jnp.float32), 'be1': jnp.zeros((D,), jnp.float32),
        'w1': w(ks[8], (d_ff, D)), 'bf1': w(ks[9], (d_ff,)),
        'w2': w(ks[10], (D, d_ff)), 'bf2': w(ks[11], (D,)),
        'g2': jnp.ones((D,), jnp.float32), 'be2': jnp.zeros((D,), jnp.float32),
    }

    x = jax.random.normal(ks[12], (B, S, D), dtype=jnp.float32)
    attn_mask = jax.random.bernoulli(ks[13], 0.2, (B, S, S))   # True == masked
    # keep at least one unmasked key per query row (additive-bias vs masked_fill only differ
    # in the degenerate all-masked-row case)
    attn_mask = attn_mask.at[:, :, 0].set(False)

    ref = encoder_layer_ref(x, attn_mask, params, n_heads=H)

    # default path: bf16 MXU operands, f32 accumulation (deliberately relaxed tolerance)
    prep_bf16 = prepare_encoder_params(params, matmul_dtype=jnp.bfloat16)
    out = jax.block_until_ready(encoder_layer(x, attn_mask, prep_bf16, n_heads=H))
    assert out.shape == (B, S, D)
    assert jnp.allclose(out, ref, atol=5e-2, rtol=5e-2), float(jnp.max(jnp.abs(out - ref)))

    # f32 operand path: tight check of the kernel math itself
    prep_f32 = prepare_encoder_params(params, matmul_dtype=jnp.float32)
    out32 = jax.block_until_ready(encoder_layer(x, attn_mask, prep_f32, n_heads=H))
    assert jnp.allclose(out32, ref, atol=1e-3, rtol=1e-3), float(jnp.max(jnp.abs(out32 - ref)))

    print("KERNEL_OK")
</pallas_src>

<mosaic_0001>
module attributes {stable_mosaic.version = 11 : i64} {
  func.func @_probe(%arg0: i32, %arg1: memref<8x128xf32, #tpu.memory_space<vmem>>, %arg2: memref<8x128xf32, #tpu.memory_space<vmem>>) attributes {dimension_semantics = [#tpu.dimension_semantics<arbitrary>], iteration_bounds = array<i64: 1>, scalar_prefetch = 0 : i64, scratch_operands = 0 : i64, tpu.core_type = #tpu.core_type<tc>, window_params = [{pipeline_mode = #tpu.pipeline_mode<synchronous>, transform_indices = @transform_0, window_bounds = array<i64: 8, 128>}, {pipeline_mode = #tpu.pipeline_mode<synchronous>, transform_indices = @transform_1, window_bounds = array<i64: 8, 128>}]} {
    %c0 = arith.constant 0 : index
    %c0_0 = arith.constant 0 : index
    %0 = vector.load %arg1[%c0, %c0_0] : memref<8x128xf32, #tpu.memory_space<vmem>>, vector<8x128xf32>
    %cst = arith.constant 1.000000e+00 : f32
    %1 = vector.broadcast %cst : f32 to vector<8x128xf32>
    %2 = arith.addf %0, %1 : vector<8x128xf32>
    %c0_1 = arith.constant 0 : index
    %c0_2 = arith.constant 0 : index
    %3 = vector.load %arg2[%c0_1, %c0_2] : memref<8x128xf32, #tpu.memory_space<vmem>>, vector<8x128xf32>
    tpu.vector_store %arg2[%c0_1, %c0_2], %2 {strides = array<i32>} : memref<8x128xf32, #tpu.memory_space<vmem>>, vector<8x128xf32>,
    return
  }
  func.func @transform_0(%arg0: i32) -> (i32, i32) {
    %c0_i32 = arith.constant 0 : i32
    %c0_i32_0 = arith.constant 0 : i32
    %c0_i32_1 = arith.constant 0 : i32
    return %c0_i32, %c0_i32_0 : i32, i32
  }
  func.func @transform_1(%arg0: i32) -> (i32, i32) {
    %c0_i32 = arith.constant 0 : i32
    %c0_i32_0 = arith.constant 0 : i32
    %c0_i32_1 = arith.constant 0 : i32
    return %c0_i32, %c0_i32_0 : i32, i32
  }
}

module attributes {stable_mosaic.version = 11 : i64} {
  func.func @_kv_proj_kernel(%arg0: i32, %arg1: memref<16x32xf32, #tpu.memory_space<vmem>>, %arg2: memref<32x32xbf16, #tpu.memory_space<vmem>>, %arg3: memref<1x32xf32, #tpu.memory_space<vmem>>, %arg4: memref<32x32xbf16, #tpu.memory_space<vmem>>, %arg5: memref<1x32xf32, #tpu.memory_space<vmem>>, %arg6: memref<16x32xbf16, #tpu.memory_space<vmem>>, %arg7: memref<16x32xbf16, #tpu.memory_space<vmem>>) attributes {dimension_semantics = [#tpu.dimension_semantics<parallel>], iteration_bounds = array<i64: 1>, scalar_prefetch = 0 : i64, scratch_operands = 0 : i64, tpu.core_type = #tpu.core_type<tc>, window_params = [{transform_indices = @transform_0, window_bounds = array<i64: 16, 32>}, {pipeline_mode = #tpu.pipeline_mode<synchronous>, transform_indices = @transform_1, window_bounds = array<i64: 32, 32>}, {pipeline_mode = #tpu.pipeline_mode<synchronous>, transform_indices = @transform_2, window_bounds = array<i64: 1, 32>}, {pipeline_mode = #tpu.pipeline_mode<synchronous>, transform_indices = @transform_3, window_bounds = array<i64: 32, 32>}, {pipeline_mode = #tpu.pipeline_mode<synchronous>, transform_indices = @transform_4, window_bounds = array<i64: 1, 32>}, {transform_indices = @transform_5, window_bounds = array<i64: 16, 32>}, {transform_indices = @transform_6, window_bounds = array<i64: 16, 32>}]} {
    %c0 = arith.constant 0 : index
    %c0_0 = arith.constant 0 : index
    %0 = vector.load %arg1[%c0, %c0_0] : memref<16x32xf32, #tpu.memory_space<vmem>>, vector<16x32xf32>
    %1 = arith.truncf %0 : vector<16x32xf32> to vector<16x32xbf16>
    %c0_1 = arith.constant 0 : index
    %c0_2 = arith.constant 0 : index
    %2 = vector.load %arg4[%c0_1, %c0_2] : memref<32x32xbf16, #tpu.memory_space<vmem>>, vector<32x32xbf16>
    %cst = arith.constant dense<0.000000e+00> : vector<16x32xf32>
    %3 = tpu.matmul %1, %2, %cst {dimension_numbers = #tpu.dot_dimension_numbers<[1], [0], [0], [1], [0, 0, 1, 1], [], []>} : vector<16x32xbf16>, vector<32x32xbf16>, vector<16x32xf32> -> vector<16x32xf32>
    %c0_3 = arith.constant 0 : index
    %c0_4 = arith.constant 0 : index
    %4 = vector.load %arg5[%c0_3, %c0_4] : memref<1x32xf32, #tpu.memory_space<vmem>>, vector<1x32xf32>
    %5 = vector.broadcast %4 : vector<1x32xf32> to vector<16x32xf32>
    %6 = arith.addf %3, %5 : vector<16x32xf32>
    %c0_5 = arith.constant 0 : index
    %c0_6 = arith.constant 0 : index
    %7 = vector.load %arg2[%c0_5, %c0_6] : memref<32x32xbf16, #tpu.memory_space<vmem>>, vector<32x32xbf16>
    %cst_7 = arith.constant dense<0.000000e+00> : vector<16x32xf32>
    %8 = tpu.matmul %1, %7, %cst_7 {dimension_numbers = #tpu.dot_dimension_numbers<[1], [0], [0], [1], [0, 0, 1, 1], [], []>} : vector<16x32xbf16>, vector<32x32xbf16>, vector<16x32xf32> -> vector<16x32xf32>
    %c0_8 = arith.constant 0 : index
    %c0_9 = arith.constant 0 : index
    %9 = vector.load %arg3[%c0_8, %c0_9] : memref<1x32xf32, #tpu.memory_space<vmem>>, vector<1x32xf32>
    %10 = vector.broadcast %9 : vector<1x32xf32> to vector<16x32xf32>
    %11 = arith.addf %8, %10 : vector<16x32xf32>
    %12 = arith.truncf %6 : vector<16x32xf32> to vector<16x32xbf16>
    %c0_10 = arith.constant 0 : index
    %c0_11 = arith.constant 0 : index
    %13 = vector.load %arg6[%c0_10, %c0_11] : memref<16x32xbf16, #tpu.memory_space<vmem>>, vector<16x32xbf16>
    tpu.vector_store %arg6[%c0_10, %c0_11], %12 {strides = array<i32>} : memref<16x32xbf16, #tpu.memory_space<vmem>>, vector<16x32xbf16>,
    %14 = arith.truncf %11 : vector<16x32xf32> to vector<16x32xbf16>
    %c0_12 = arith.constant 0 : index
    %c0_13 = arith.constant 0 : index
    %15 = vector.load %arg7[%c0_12, %c0_13] : memref<16x32xbf16, #tpu.memory_space<vmem>>, vector<16x32xbf16>
    tpu.vector_store %arg7[%c0_12, %c0_13], %14 {strides = array<i32>} : memref<16x32xbf16, #tpu.memory_space<vmem>>, vector<16x32xbf16>,
    return
  }
  func.func @transform_0(%arg0: i32) -> (i32, i32) {
    %c0_i32 = arith.constant 0 : i32
    %c0_i32_0 = arith.constant 0 : i32
    return %arg0, %c0_i32 : i32, i32
  }
  func.func @transform_1(%arg0: i32) -> (i32, i32) {
    %c0_i32 = arith.constant 0 : i32
    %c0_i32_0 = arith.constant 0 : i32
    %c0_i32_1 = arith.constant 0 : i32
    return %c0_i32, %c0_i32_0 : i32, i32
  }
  func.func @transform_2(%arg0: i32) -> (i32, i32) {
    %c0_i32 = arith.constant 0 : i32
    %c0_i32_0 = arith.constant 0 : i32
    %c0_i32_1 = arith.constant 0 : i32
    return %c0_i32, %c0_i32_0 : i32, i32
  }
  func.func @transform_3(%arg0: i32) -> (i32, i32) {
    %c0_i32 = arith.constant 0 : i32
    %c0_i32_0 = arith.constant 0 : i32
    %c0_i32_1 = arith.constant 0 : i32
    return %c0_i32, %c0_i32_0 : i32, i32
  }
  func.func @transform_4(%arg0: i32) -> (i32, i32) {
    %c0_i32 = arith.constant 0 : i32
    %c0_i32_0 = arith.constant 0 : i32
    %c0_i32_1 = arith.constant 0 : i32
    return %c0_i32, %c0_i32_0 : i32, i32
  }
  func.func @transform_5(%arg0: i32) -> (i32, i32) {
    %c0_i32 = arith.constant 0 : i32
    %c0_i32_0 = arith.constant 0 : i32
    return %arg0, %c0_i32 : i32, i32
  }
  func.func @transform_6(%arg0: i32) -> (i32, i32) {
    %c0_i32 = arith.constant 0 : i32
    %c0_i32_0 = arith.constant 0 : i32
    return %arg0, %c0_i32 : i32, i32
  }
}

</mosaic_0001>

<bundles_post_ra>
// kernel: tpu_custom_call.1
= control target key start
LH: loop header
LB: loop body
LE: loop exit
PB: predicated region body
PF: predicated region fallthrough
CT: control target
= control target key end

     0   :  { %6 = vsyncpa [#allocation3], 0  ;;  %s115_s0 = inlined_call_operand.hbm [shape: f32[8,128], index: 0, kind: input, shape index: {}]   ;;  %s116_s1 = inlined_call_operand.hbm [shape: f32[8,128], index: 1, kind: output, shape index: {}]  }
   0x1   :  { %7 = vsyncpa [#allocation4], 0  ;;  %s13_s8 = sshll.u32 %s115_s0, 4  ;;  %s97_s9 = smov [#allocation2]   ;;  %s14_s8 = int_to_ptr.hbm [resolvable:$true] %s13_s8 }
   0x2   :  { %s15_s10 = sshll.u32 %s97_s9, 4  ;;  %s16_s10 = int_to_ptr.vmem [resolvable:$true] %s15_s10 }
   0x3   :  { %18 = dma.hbm_to_vmem [thread:$0]  %s14_s8, 128, %s16_s10, [#allocation3]  }
   0x4   :  { %93 = dma.done.wait [#allocation3], 128  }
   0x5   :  { %94 = vsyncadd [#allocation3], 4294967168  ;;  %s98_s11 = smov [#allocation5]   ;;  %s33_s15 = sshll.u32 %s116_s1, 4  ;;  %v23_v0 = vld [vmem:[#allocation2] sm:$0xff]  ;;  %s34_s15 = int_to_ptr.hbm [resolvable:$true] %s33_s15 }
   0x6   :  { %s31_s12 = sshll.u32 %s98_s11, 4  ;;  %v24_v1 = vadd.f32 1.0, %v23_v0  ;;  %s32_s12 = int_to_ptr.vmem [resolvable:$true] %s31_s12 }
   0x8   :  { %25 = vst [vmem:[#allocation5] sm:$0xff] %v24_v1 }
   0x9   :  { %36 = dma.vmem_to_hbm [thread:$0]  %s32_s12, 128, %s34_s15, [#allocation4]  }
   0xa   :  { %95 = dma.done.wait [#allocation4], 128  }
   0xb   :  { %96 = vsyncadd [#allocation4], 4294967168 }
   0xc   :  { %41 = vsyncpa [#allocation3], 1 }
   0xd   :  { %42 = vsyncpa [#allocation4], 1 }

// kernel: tpu_custom_call.1
= control target key start
LH: loop header
LB: loop body
LE: loop exit
PB: predicated region body
PF: predicated region fallthrough
CT: control target
= control target key end

     0   :  { %12 = vsyncpa [#allocation3], 0  ;;  %s436_s0 = inlined_call_operand.hbm [shape: f32[16,32], index: 0, kind: input, shape index: {}]   ;;  %s437_s1 = inlined_call_operand.hbm [shape: bf16[32,32], index: 1, kind: input, shape index: {}]   ;;  %s438_s2 = inlined_call_operand.vmem [shape: f32[1,32], index: 2, kind: input, shape index: {}]   ;;  %s439_s3 = inlined_call_operand.hbm [shape: bf16[32,32], index: 3, kind: input, shape index: {}]   ;;  %s440_s4 = inlined_call_operand.vmem [shape: f32[1,32], index: 4, kind: input, shape index: {}]   ;;  %s441_s5 = inlined_call_operand.hbm [shape: bf16[16,32], index: 5, kind: output, shape index: {0}]   ;;  %s442_s6 = inlined_call_operand.hbm [shape: bf16[16,32], index: 6, kind: output, shape index: {1}]  }
   0x1   :  { %13 = vsyncpa [#allocation6], 0 }
   0x2   :  { %14 = vsyncpa [#allocation4], 0  ;;  %s33_s23 = sshll.u32 %s437_s1, 4  ;;  %s34_s23 = int_to_ptr.hbm [resolvable:$true] %s33_s23 }
   0x3   :  { %15 = vsyncpa [#allocation10], 0  ;;  %s355_s24 = smov [#allocation5]   ;;  %s20_s28 = sshll.u32 %s436_s0, 4  ;;  %s21_s28 = int_to_ptr.hbm [resolvable:$true] %s20_s28 }
   0x4   :  { %s35_s25 = sshll.u32 %s355_s24, 4  ;;  %s356_s29 = smov 64   ;;  %s36_s25 = int_to_ptr.vmem [resolvable:$true] %s35_s25 }
   0x5   :  { %s357_s30 = smov 4   ;;  %s358_s7 = smov [#allocation2]  }
   0x6   :  { %41 = dma.hbm_to_vmem [thread:$0]  %s34_s23, 256, %s36_s25, [#allocation6], %s356_s29, %s356_s29, %s357_s30  }
   0x7   :  { %s22_s8 = sshll.u32 %s358_s7, 4  ;;  %s359_s1 = smov 128   ;;  %s23_s8 = int_to_ptr.vmem [resolvable:$true] %s22_s8 }
   0x8   :  { %s360_s9 = smov 8   ;;  %s48_s12 = sshll.u32 %s439_s3, 4  ;;  %s49_s12 = int_to_ptr.hbm [resolvable:$true] %s48_s12 }
   0x9   :  { %28 = dma.hbm_to_vmem [thread:$0]  %s21_s28, 256, %s23_s8, [#allocation3], %s359_s1, %s359_s1, %s360_s9  }
   0xa   :  { %s361_s13 = smov [#allocation7]  }
   0xb   :  { %s50_s0 = sshll.u32 %s361_s13, 4  ;;  %s51_s0 = int_to_ptr.vmem [resolvable:$true] %s50_s0 }
   0xc   :  { %56 = dma.hbm_to_vmem [thread:$0]  %s49_s12, 256, %s51_s0, [#allocation6], %s356_s29, %s356_s29, %s357_s30  }
   0xd   :  { %347 = dma.done.wait [#allocation3], 256  }
   0xe   :  { %348 = vsyncadd [#allocation3], 4294967040 }
   0xf   :  { %349 = dma.done.wait [#allocation6], 512  }
  0x10   :  { %350 = vsyncadd [#allocation6], 4294966784  ;;  %v213_v0 = vld [vmem:[#allocation7 + $0x8] sm:$0xff]  ;;  %v215_v1 = vld [vmem:[#allocation5 + $0x8] sm:$0xff]  ;;  %vm95_vm0 = vcmask 261120   ;;  %vm149_vm1 = vcmask 257024  }
  0x11   :  { %v212_v2 = vld [vmem:[#allocation7] sm:$0xff]  ;;  %v214_v3 = vld [vmem:[#allocation5] sm:$0xff]  ;;  %105 = vmatpush.bf16.msra.mxu0 %v213_v0  ;;  %139 = vmatpush.bf16.msra.mxu1 %v215_v1  ;;  %v73_v5 = vld [vmem:[#allocation2 + $0x8] sm:$0xff]  ;;  %s362_s17 = smov [#allocation8]   ;;  %s162_s20 = sshll.u32 %s441_s5, 4  ;;  %s163_s20 = int_to_ptr.hbm [resolvable:$true] %s162_s20 }
  0x12   :  { %v72_v4 = vld [vmem:[#allocation2] sm:$0xff]  ;;  %s160_s18 = sshll.u32 %s362_s17, 4  ;;  %s175_s24 = sshll.u32 %s442_s6, 4  ;;  %s161_s18 = int_to_ptr.vmem [resolvable:$true] %s160_s18  ;;  %s176_s24 = int_to_ptr.hbm [resolvable:$true] %s175_s24 }
  0x13   :  { %v74_v6 = vpack.c.bf16 %v73_v5, %v72_v4  ;;  %v225_v7 = vld [vmem:[%s440_s4] ss:$0 sm:$0xff] }
  0x14   :  { %v226_v8 = vld [vmem:[%s438_s2] ss:$0 sm:$0xff]  ;;  %s363_s2 = smov [#allocation9]  }
  0x15   :  { %106 = vmatpush.bf16.msra.mxu0 %v212_v2  ;;  %140 = vmatpush.bf16.msra.mxu1 %v214_v3  ;;  %s173_s21 = sshll.u32 %s363_s2, 4  ;;  %s174_s21 = int_to_ptr.vmem [resolvable:$true] %s173_s21 }
  0x18   :  { %202 = vmatmul.msk.bf16.vlgmr.msra.gmra.mxu0 %vm95_vm0, %v74_v6  ;;  %211 = vmatmul.msk.bf16.vlgmr.msra.gmra.mxu1 %vm95_vm0, %v74_v6 }
  0x95   :  { %v108_v9 = vpop.f32.mrf.mxu0  ;;  %v142_v10 = vpop.f32.mrf.mxu1 }
  0x96   :  { %v109_v11 = vadd.f32 %v225_v7, %v108_v9  ;;  %v143_v12 = vadd.f32 %v226_v8, %v142_v10 }
  0x98   :  { %v147_v13 = vpack.c.bf16 %v109_v11, %v109_v11  ;;  %v152_v14 = vpack.c.bf16 %v143_v12, %v143_v12 }
  0x9a   :  { %150 = vst.msk [vmem:[#allocation8] sm:$0xf] %vm149_vm1, %v147_v13 }
  0x9b   :  { %154 = vst.msk [vmem:[#allocation9] sm:$0xf] %vm149_vm1, %v152_v14 }
  0x9d   :  { %v110_v15 = vpop.f32.mrf.mxu0  ;;  %v144_v16 = vpop.f32.mrf.mxu1 }
  0x9e   :  { %v111_v17 = vadd.f32 %v225_v7, %v110_v15  ;;  %v145_v18 = vadd.f32 %v226_v8, %v144_v16 }
  0xa0   :  { %v148_v19 = vpack.c.bf16 %v111_v17, %v111_v17  ;;  %v153_v20 = vpack.c.bf16 %v145_v18, %v145_v18 }
  0xa2   :  { %151 = vst.msk [vmem:[#allocation8 + $0x4] sm:$0xf] %vm149_vm1, %v148_v19 }
  0xa3   :  { %155 = vst.msk [vmem:[#allocation9 + $0x4] sm:$0xf] %vm149_vm1, %v153_v20  ;;  %168 = dma.vmem_to_hbm [thread:$0]  %s161_s18, 128, %s163_s20, [#allocation4], %s356_s29, %s356_s29, %s357_s30  }
  0xa4   :  { %181 = dma.vmem_to_hbm [thread:$0]  %s174_s21, 128, %s176_s24, [#allocation10], %s356_s29, %s356_s29, %s357_s30  }
  0xa5   :  { %351 = dma.done.wait [#allocation4], 128  }
  0xa6   :  { %352 = vsyncadd [#allocation4], 4294967168 }
  0xa7   :  { %353 = dma.done.wait [#allocation10], 128  }
  0xa8   :  { %354 = vsyncadd [#allocation10], 4294967168 }
  0xa9   :  { %190 = vsyncpa [#allocation3], 1 }
  0xaa   :  { %191 = vsyncpa [#allocation6], 1 }
  0xab   :  { %192 = vsyncpa [#allocation4], 1 }
  0xac   :  { %193 = vsyncpa [#allocation10], 1 }

</bundles_post_ra>
